<compile_context>
chip_gen: v6e
topology: v6e:2x2x1
jax: 0.10.0
libtpu: 0.0.40
codegen_flags: <defaults>
</compile_context>

<pallas_src>
import jax
import jax.numpy as jnp
from jax.experimental import pallas as pl
from jax.experimental.pallas import tpu as pltpu

LANES = 128                 # vreg lane width
DEFAULT_ROWS_PER_BLOCK = 4096   # 4096 x 128 x 4B = 2 MiB per f32 block
MIN_ROWS_PER_BLOCK = 512        # never shrink below ~256 KiB f32 per block
SMALL_N_FAST_PATH = 16384       # below this, plain jnp beats a pallas_call


def affine_kernel(x_ref, w_ref, b_ref, o_ref):
    # x_ref: (tr, 128) VMEM tile in the original dtype; w_ref/b_ref: (1,) f32 SMEM scalars.
    # out = x * w + b  -- a single broadcast FMA per vreg on the VPU; cast in-kernel.
    x = x_ref[...].astype(jnp.float32)
    o_ref[...] = (x * w_ref[0] + b_ref[0]).astype(o_ref.dtype)


def _affine_pallas(x2d, w_s, b_s, rows, itemsize, rows_per_block):
    """Run the lane-dense (rows, 128) slab through the tiled Pallas kernel."""
    # Sublane multiple for the block row dim: 8 for 4B, 16 for 2B, 32 for 1B dtypes.
    sub = max(8, 32 // max(1, itemsize))

    tr = min(rows_per_block, rows)
    if tr < rows:
        # Multi-block: keep >= 4 grid steps when there is enough work so the
        # "parallel" axis gives both v7x TensorCores >= 2 blocks each, but do
        # not shrink blocks below ~256 KiB (would become overhead-bound).
        tr_target = max(MIN_ROWS_PER_BLOCK, pl.cdiv(rows, 4))
        tr = min(tr, tr_target)
        tr = max(sub, (tr // sub) * sub)   # round down to a sublane multiple
        if tr >= rows:                      # degenerate: back to a single full block
            tr = rows

    grid = (pl.cdiv(rows, tr),)            # partial final block allowed; Pallas masks it

    return pl.pallas_call(
        affine_kernel,
        out_shape=jax.ShapeDtypeStruct((rows, LANES), x2d.dtype),
        grid=grid,
        in_specs=[
            pl.BlockSpec((tr, LANES), lambda i: (i, 0)),        # x tile in VMEM
            pl.BlockSpec(memory_space=pltpu.MemorySpace.SMEM),  # weight scalar
            pl.BlockSpec(memory_space=pltpu.MemorySpace.SMEM),  # bias scalar
        ],
        out_specs=pl.BlockSpec((tr, LANES), lambda i: (i, 0)),
        compiler_params=pltpu.CompilerParams(
            dimension_semantics=("parallel",),
        ),
        cost_estimate=pl.CostEstimate(
            flops=2 * rows * LANES,
            transcendentals=0,
            bytes_accessed=2 * rows * LANES * itemsize,
        ),
    )(x2d, w_s, b_s)


def mnist_cnn_model_forward(x, w, b, *,
                            rows_per_block=DEFAULT_ROWS_PER_BLOCK,
                            min_pallas_elems=SMALL_N_FAST_PATH):
    """Forward pass of MnistCNNModel: out = x @ W^T + b with W, b of Linear(1, 1).

    x: (..., 1) array (PyTorch Linear(1,1) input), w: (1, 1), b: (1,).
    Returns an array of the same shape and dtype as x.
    """
    orig_shape = x.shape
    orig_dtype = x.dtype
    itemsize = jnp.dtype(orig_dtype).itemsize

    w_s = w.reshape(-1).astype(jnp.float32)   # (1,) f32 scalar for SMEM
    b_s = b.reshape(-1).astype(jnp.float32)   # (1,) f32 scalar for SMEM

    # With in_features == out_features == 1 the op is purely elementwise.
    flat = x.reshape(-1)
    n = flat.shape[0]
    n_main = (n // LANES) * LANES

    # Small-n fast path: the pallas_call launch dominates; plain jnp is faster.
    if n_main == 0 or n < min_pallas_elems:
        out = (flat.astype(jnp.float32) * w_s[0] + b_s[0]).astype(orig_dtype)
        return out.reshape(orig_shape)

    if n == n_main:
        # Lane-aligned: pure reshape in / pure reshape out, zero extra HBM copies.
        rows = n // LANES
        x2d = flat.reshape(rows, LANES)
        out2d = _affine_pallas(x2d, w_s, b_s, rows, itemsize, rows_per_block)
        return out2d.reshape(orig_shape)

    # Ragged: kernel handles the 128-aligned prefix, jnp handles the <128 tail.
    rows = n_main // LANES
    x2d = flat[:n_main].reshape(rows, LANES)
    out2d = _affine_pallas(x2d, w_s, b_s, rows, itemsize, rows_per_block)
    tail = flat[n_main:]
    tail_out = (tail.astype(jnp.float32) * w_s[0] + b_s[0]).astype(orig_dtype)
    out_flat = jnp.concatenate([out2d.reshape(-1), tail_out])
    return out_flat.reshape(orig_shape)


if __name__ == "__main__":
    key = jax.random.PRNGKey(0)
    k_x, k_w, k_b, k_x2, k_x3 = jax.random.split(key, 5)

    # PyTorch nn.Linear(1, 1) init: U(-1/sqrt(in_f), 1/sqrt(in_f)) = U(-1, 1)
    w = jax.random.uniform(k_w, (1, 1), dtype=jnp.float32, minval=-1.0, maxval=1.0)
    b = jax.random.uniform(k_b, (1,), dtype=jnp.float32, minval=-1.0, maxval=1.0)

    # Small shape through the Pallas kernel (force past the small-n fast path):
    # (256, 1) -> 2 rows of 128 lanes, single block.
    B = 256
    x = jax.random.normal(k_x, (B, 1), dtype=jnp.float32)
    out = mnist_cnn_model_forward(x, w, b, min_pallas_elems=0)
    jax.block_until_ready(out)
    ref = x @ w.T + b
    assert out.shape == ref.shape and out.dtype == ref.dtype, "shape/dtype mismatch"
    assert jnp.allclose(out, ref, atol=1e-5), "mismatch vs reference (small B kernel)"

    # Tiny batch exercises the jnp fast path (default threshold).
    x_tiny = jax.random.normal(k_x2, (8, 1), dtype=jnp.float32)
    out_tiny = mnist_cnn_model_forward(x_tiny, w, b)
    jax.block_until_ready(out_tiny)
    ref_tiny = x_tiny @ w.T + b
    assert jnp.allclose(out_tiny, ref_tiny, atol=1e-5), "mismatch vs reference (tiny B)"

    # Large ragged batch: multi-step grid with a partial final block + jnp tail.
    # 3,000,000 elements -> 23437 rows (prefix) + 64-element tail.
    B2 = 3_000_000
    x2 = jax.random.normal(k_x3, (B2, 1), dtype=jnp.float32)
    out2 = mnist_cnn_model_forward(x2, w, b)
    jax.block_until_ready(out2)
    ref2 = x2 @ w.T + b
    assert jnp.allclose(out2, ref2, atol=1e-5), "mismatch vs reference (large ragged B)"

    print("KERNEL_OK")
</pallas_src>

<mosaic_0001>
module attributes {stable_mosaic.version = 11 : i64} {
  func.func @affine_kernel(%arg0: i32, %arg1: memref<2x128xf32, #tpu.memory_space<vmem>>, %arg2: memref<1xf32, #tpu.memory_space<smem>>, %arg3: memref<1xf32, #tpu.memory_space<smem>>, %arg4: memref<2x128xf32, #tpu.memory_space<vmem>>) attributes {dimension_semantics = [#tpu.dimension_semantics<parallel>], iteration_bounds = array<i64: 1>, scalar_prefetch = 0 : i64, scratch_operands = 0 : i64, tpu.core_type = #tpu.core_type<tc>, window_params = [{transform_indices = @transform_0, window_bounds = array<i64: 2, 128>}, {transform_indices = @transform_1, window_bounds = array<i64: 1>}, {transform_indices = @transform_2, window_bounds = array<i64: 1>}, {transform_indices = @transform_3, window_bounds = array<i64: 2, 128>}]} {
    %c0 = arith.constant 0 : index
    %c0_0 = arith.constant 0 : index
    %0 = vector.load %arg1[%c0, %c0_0] : memref<2x128xf32, #tpu.memory_space<vmem>>, vector<2x128xf32>
    %c0_1 = arith.constant 0 : index
    %1 = memref.load %arg2[%c0_1] : memref<1xf32, #tpu.memory_space<smem>>
    %2 = vector.broadcast %1 : f32 to vector<2x128xf32>
    %3 = arith.mulf %0, %2 : vector<2x128xf32>
    %c0_2 = arith.constant 0 : index
    %4 = memref.load %arg3[%c0_2] : memref<1xf32, #tpu.memory_space<smem>>
    %5 = vector.broadcast %4 : f32 to vector<2x128xf32>
    %6 = arith.addf %3, %5 : vector<2x128xf32>
    %c0_3 = arith.constant 0 : index
    %c0_4 = arith.constant 0 : index
    %7 = vector.load %arg4[%c0_3, %c0_4] : memref<2x128xf32, #tpu.memory_space<vmem>>, vector<2x128xf32>
    tpu.vector_store %arg4[%c0_3, %c0_4], %6 {strides = array<i32>} : memref<2x128xf32, #tpu.memory_space<vmem>>, vector<2x128xf32>,
    return
  }
  func.func @transform_0(%arg0: i32) -> (i32, i32) {
    %c0_i32 = arith.constant 0 : i32
    %c0_i32_0 = arith.constant 0 : i32
    return %arg0, %c0_i32 : i32, i32
  }
  func.func @transform_1(%arg0: i32) -> i32 {
    %c0_i32 = arith.constant 0 : i32
    %c0_i32_0 = arith.constant 0 : i32
    return %c0_i32 : i32
  }
  func.func @transform_2(%arg0: i32) -> i32 {
    %c0_i32 = arith.constant 0 : i32
    %c0_i32_0 = arith.constant 0 : i32
    return %c0_i32 : i32
  }
  func.func @transform_3(%arg0: i32) -> (i32, i32) {
    %c0_i32 = arith.constant 0 : i32
    %c0_i32_0 = arith.constant 0 : i32
    return %arg0, %c0_i32 : i32, i32
  }
}

</mosaic_0001>

<bundles_post_ra>
// kernel: tpu_custom_call.1
= control target key start
LH: loop header
LB: loop body
LE: loop exit
PB: predicated region body
PF: predicated region fallthrough
CT: control target
= control target key end

     0   :  { %s95_s0 = inlined_call_operand.vmem [shape: f32[2,128], index: 0, kind: input, shape index: {}]   ;;  %s96_s1 = inlined_call_operand.<no memory space> [shape: f32[1], index: 1, kind: input, shape index: {}]   ;;  %s97_s2 = inlined_call_operand.<no memory space> [shape: f32[1], index: 2, kind: input, shape index: {}]   ;;  %s98_s3 = inlined_call_operand.hbm [shape: f32[2,128], index: 3, kind: output, shape index: {}]  }
   0x1   :  { %v17_v0 = vld [vmem:[%s95_s0] sm:$0x3]  ;;  %v19_v1 = vstv %s96_s1  ;;  %v22_v2 = vstv %s97_s2 }
   0x2   :  { %10 = vsyncpa [#allocation5], 0  ;;  %v20_v3 = vmul.f32 %v19_v1, %v17_v0  ;;  %s62_s18 = smov [#allocation4]  }
   0x3   :  { %s31_s19 = sshll.u32 %s62_s18, 4  ;;  %s32_s19 = int_to_ptr.vmem [resolvable:$true] %s31_s19 }
   0x4   :  { %v23_v4 = vadd.f32 %v22_v2, %v20_v3  ;;  %s40_s20 = scalar_lea.vmem %s32_s19, 32  ;;  %p45_p1 = scmp.lt.s32.totalorder %s32_s19, %s32_s19 }
   0x5   :  { %p41_p0 = scmp.ne.s32.totalorder %s32_s19, %s40_s20  ;;  %p46_p2 = scmp.lt.s32.totalorder %s40_s20, %s40_s20 }
   0x6   :  { %24 = vst [vmem:[#allocation4] sm:$0x3] %v23_v4 }
   0x7   :  { %p47_p3 = por %p46_p2, %p45_p1 }
   0x9   :  { %p48_p4 = pnand %p47_p3, %p41_p0 }
   0xb   :  { %51 = shalt.err (!%p48_p4)
}
   0xc   :  { %34 = dma.vmem_to_hbm [thread:$0]  %s32_s19, 32, %s98_s3, [#allocation5]  }
   0xd   :  { %60 = dma.done.wait [#allocation5], 32  }
   0xe   :  { %61 = vsyncadd [#allocation5], 4294967264 }
   0xf   :  { %38 = vsyncpa [#allocation5], 1 }

</bundles_post_ra>
